<compile_context>
chip_gen: v6e
topology: v6e:2x2x1
jax: 0.10.0
libtpu: 0.0.40
codegen_flags: <defaults>
</compile_context>

<pallas_src>
import jax
import jax.numpy as jnp
from jax.experimental import pallas as pl
from jax.experimental.pallas import tpu as pltpu


def _make_basic_block_kernel(num_layers: int):
  """Kernel: ReLU(1x1 conv) * num_layers on 4 fused phases, then phase-max."""

  def kernel(x_ref, *args):
    # args = (w_0, b_0, w_1, b_1, ..., w_{L-1}, b_{L-1}, out_ref)
    out_ref = args[-1]
    wb = args[:-1]

    # (Cin, 4*S_tile): the four 2x2-pool phases of this spatial tile,
    # concatenated along the lane axis.
    act = x_ref[0, 0, :, :].astype(jnp.float32)

    # Static (unrolled) loop over the 1x1-conv layers: one wide per-pixel
    # matmul over channels on the MXU (f32 accumulate), bias + ReLU on the VPU.
    for l in range(num_layers):
      w = wb[2 * l][...].astype(jnp.float32)                # (Cout_l, Cin_l)
      b = wb[2 * l + 1][...].astype(jnp.float32)            # (Cout_l, 1)
      act = jnp.dot(w, act, preferred_element_type=jnp.float32) + b
      act = jnp.maximum(act, 0.0)

    # 2x2 max-pool == elementwise max over the four phase activations.
    st = act.shape[1] // 4
    pooled = jnp.maximum(
        jnp.maximum(act[:, 0 * st:1 * st], act[:, 1 * st:2 * st]),
        jnp.maximum(act[:, 2 * st:3 * st], act[:, 3 * st:4 * st]))

    out_ref[0, :, :] = pooled.astype(out_ref.dtype)

  return kernel


def _pick_spatial_tile(s: int, cin: int, cout: int, dtype_bytes: int,
                       vmem_budget: int = 24 * 1024 * 1024) -> int:
  """Largest spatial tile (per pooled pixel) that divides s and fits VMEM.

  Budget per pooled spatial element:
    * input block  : 4 phases x Cin, double-buffered
    * output block : Cout, double-buffered
    * live f32 activations inside the kernel: ~4 x (Cin + Cout)
  """
  per_elem = ((4 * cin + cout) * dtype_bytes * 2) + 4 * (cin + cout) * 4
  max_tile = max(128, vmem_budget // max(per_elem, 1))
  if s <= max_tile:
    return s
  # Prefer lane-aligned (multiple-of-128) tiles that divide s exactly.
  t = (max_tile // 128) * 128
  while t >= 128:
    if s % t == 0:
      return t
    t -= 128
  # Fall back to the largest divisor of s that fits the budget.
  for d in range(min(s, max_tile), 0, -1):
    if s % d == 0:
      return d
  return s


def basic_block_forward(x, weights, biases):
  """BasicBlock forward: [Conv2d 1x1 + ReLU] * L, then MaxPool2d(2).

  x: (N, Cin, H, W) in NCHW (PyTorch layout).
  weights[l]: (Cout_l, Cin_l);  biases[l]: (Cout_l,).
  returns: (N, Cout, H // 2, W // 2).
  """
  n, cin, h, w = x.shape
  num_layers = len(weights)
  assert num_layers >= 1
  cout = weights[0].shape[0]
  hp, wp = h // 2, w // 2
  assert hp >= 1 and wp >= 1, "MaxPool2d(2) needs H >= 2 and W >= 2"
  s = hp * wp

  dtype_bytes = jnp.dtype(x.dtype).itemsize
  s_tile = _pick_spatial_tile(s, cin, cout, dtype_bytes)
  n_tiles = s // s_tile

  # Crop odd trailing row/col (PyTorch MaxPool2d floor behaviour), split into
  # the four 2x2 phases and lay out each spatial tile's four phases
  # contiguously along the last (lane) axis:  xp[n, t, c, p*s_tile + j].
  xc = x[:, :, : 2 * hp, : 2 * wp]
  xr = xc.reshape(n, cin, hp, 2, wp, 2)
  phases = xr.transpose(0, 1, 3, 5, 2, 4).reshape(n, cin, 4, s)   # (N,Cin,4,S)
  xp = (phases.reshape(n, cin, 4, n_tiles, s_tile)
        .transpose(0, 3, 1, 2, 4)
        .reshape(n, n_tiles, cin, 4 * s_tile))                    # (N,T,Cin,4*St)

  grid = (n, n_tiles)

  in_specs = [
      pl.BlockSpec((1, 1, cin, 4 * s_tile), lambda bi, si: (bi, si, 0, 0))
  ]
  args = [xp]
  for wl, bl in zip(weights, biases):
    # Constant index maps -> fetched into VMEM once, resident for all steps.
    in_specs.append(pl.BlockSpec(wl.shape, lambda bi, si: (0, 0)))
    in_specs.append(pl.BlockSpec((wl.shape[0], 1), lambda bi, si: (0, 0)))
    args.append(wl)
    args.append(bl.reshape(wl.shape[0], 1))

  out_spec = pl.BlockSpec((1, cout, s_tile), lambda bi, si: (bi, 0, si))

  out = pl.pallas_call(
      _make_basic_block_kernel(num_layers),
      out_shape=jax.ShapeDtypeStruct((n, cout, s), x.dtype),
      grid_spec=pltpu.PrefetchScalarGridSpec(
          num_scalar_prefetch=0,
          grid=grid,
          in_specs=in_specs,
          out_specs=out_spec,
      ),
      compiler_params=pltpu.CompilerParams(
          dimension_semantics=("parallel", "parallel"),
          vmem_limit_bytes=32 * 1024 * 1024,
      ),
  )(*args)

  return out.reshape(n, cout, hp, wp)


def _reference_basic_block(x, weights, biases):
  """Pure-JAX reference matching the PyTorch module."""
  y = x
  for wl, bl in zip(weights, biases):
    y = jnp.einsum("oc,nchw->nohw", wl, y,
                   precision=jax.lax.Precision.HIGHEST)
    y = y + bl[None, :, None, None]
    y = jnp.maximum(y, 0.0)
  nn, cc, hh, ww = y.shape
  hp, wp = hh // 2, ww // 2
  y = y[:, :, : 2 * hp, : 2 * wp].reshape(nn, cc, hp, 2, wp, 2)
  return jnp.max(y, axis=(3, 5))


if __name__ == "__main__":
  key = jax.random.PRNGKey(0)
  batch, cin, cout, h, w = 2, 8, 16, 16, 16
  conv_nums = 3

  keys = jax.random.split(key, 2 * conv_nums + 1)
  x = jax.random.normal(keys[0], (batch, cin, h, w), dtype=jnp.float32)
  weights, biases = [], []
  for l in range(conv_nums):
    c_in_l = cin if l == 0 else cout
    weights.append(0.1 * jax.random.normal(
        keys[1 + 2 * l], (cout, c_in_l), dtype=jnp.float32))
    biases.append(0.1 * jax.random.normal(
        keys[2 + 2 * l], (cout,), dtype=jnp.float32))

  fwd = jax.jit(basic_block_forward)
  out = fwd(x, tuple(weights), tuple(biases))
  out = jax.block_until_ready(out)

  ref = _reference_basic_block(x, weights, biases)
  assert out.shape == (batch, cout, h // 2, w // 2), out.shape
  max_err = float(jnp.max(jnp.abs(out - ref)))
  assert jnp.allclose(out, ref, rtol=1e-3, atol=1e-3), max_err

  print("KERNEL_OK")
</pallas_src>

<mosaic_0001>
module attributes {stable_mosaic.version = 11 : i64} {
  func.func @kernel(%arg0: i32, %arg1: i32, %arg2: memref<1x1x8x256xf32, #tpu.memory_space<vmem>>, %arg3: memref<16x8xf32, #tpu.memory_space<vmem>>, %arg4: memref<16x1xf32, #tpu.memory_space<vmem>>, %arg5: memref<16x16xf32, #tpu.memory_space<vmem>>, %arg6: memref<16x1xf32, #tpu.memory_space<vmem>>, %arg7: memref<16x16xf32, #tpu.memory_space<vmem>>, %arg8: memref<16x1xf32, #tpu.memory_space<vmem>>, %arg9: memref<1x16x64xf32, #tpu.memory_space<vmem>>) attributes {dimension_semantics = [#tpu.dimension_semantics<parallel>, #tpu.dimension_semantics<parallel>], iteration_bounds = array<i64: 2, 1>, scalar_prefetch = 0 : i64, scratch_operands = 0 : i64, tpu.core_type = #tpu.core_type<tc>, window_params = [{transform_indices = @transform_0, window_bounds = array<i64: 1, 1, 8, 256>}, {pipeline_mode = #tpu.pipeline_mode<synchronous>, transform_indices = @transform_1, window_bounds = array<i64: 16, 8>}, {pipeline_mode = #tpu.pipeline_mode<synchronous>, transform_indices = @transform_2, window_bounds = array<i64: 16, 1>}, {pipeline_mode = #tpu.pipeline_mode<synchronous>, transform_indices = @transform_3, window_bounds = array<i64: 16, 16>}, {pipeline_mode = #tpu.pipeline_mode<synchronous>, transform_indices = @transform_4, window_bounds = array<i64: 16, 1>}, {pipeline_mode = #tpu.pipeline_mode<synchronous>, transform_indices = @transform_5, window_bounds = array<i64: 16, 16>}, {pipeline_mode = #tpu.pipeline_mode<synchronous>, transform_indices = @transform_6, window_bounds = array<i64: 16, 1>}, {transform_indices = @transform_7, window_bounds = array<i64: 1, 16, 64>}]} {
    %c0 = arith.constant 0 : index
    %c0_0 = arith.constant 0 : index
    %c0_1 = arith.constant 0 : index
    %c0_2 = arith.constant 0 : index
    %0 = vector.load %arg2[%c0, %c0_0, %c0_1, %c0_2] : memref<1x1x8x256xf32, #tpu.memory_space<vmem>>, vector<1x1x8x256xf32>
    %1 = vector.shape_cast %0 : vector<1x1x8x256xf32> to vector<8x256xf32>
    %c0_3 = arith.constant 0 : index
    %c0_4 = arith.constant 0 : index
    %2 = vector.load %arg3[%c0_3, %c0_4] : memref<16x8xf32, #tpu.memory_space<vmem>>, vector<16x8xf32>
    %c0_5 = arith.constant 0 : index
    %c0_6 = arith.constant 0 : index
    %3 = vector.load %arg4[%c0_5, %c0_6] : memref<16x1xf32, #tpu.memory_space<vmem>>, vector<16x1xf32>
    %cst = arith.constant dense<0.000000e+00> : vector<16x256xf32>
    %4 = tpu.matmul %2, %1, %cst {dimension_numbers = #tpu.dot_dimension_numbers<[1], [0], [0], [1], [0, 0, 1, 1], [], []>} : vector<16x8xf32>, vector<8x256xf32>, vector<16x256xf32> -> vector<16x256xf32>
    %5 = vector.broadcast %3 : vector<16x1xf32> to vector<16x256xf32>
    %6 = arith.addf %4, %5 : vector<16x256xf32>
    %cst_7 = arith.constant 0.000000e+00 : f32
    %7 = vector.broadcast %cst_7 : f32 to vector<16x256xf32>
    %8 = arith.maximumf %6, %7 : vector<16x256xf32>
    %c0_8 = arith.constant 0 : index
    %c0_9 = arith.constant 0 : index
    %9 = vector.load %arg5[%c0_8, %c0_9] : memref<16x16xf32, #tpu.memory_space<vmem>>, vector<16x16xf32>
    %c0_10 = arith.constant 0 : index
    %c0_11 = arith.constant 0 : index
    %10 = vector.load %arg6[%c0_10, %c0_11] : memref<16x1xf32, #tpu.memory_space<vmem>>, vector<16x1xf32>
    %cst_12 = arith.constant dense<0.000000e+00> : vector<16x256xf32>
    %11 = tpu.matmul %9, %8, %cst_12 {dimension_numbers = #tpu.dot_dimension_numbers<[1], [0], [0], [1], [0, 0, 1, 1], [], []>} : vector<16x16xf32>, vector<16x256xf32>, vector<16x256xf32> -> vector<16x256xf32>
    %12 = vector.broadcast %10 : vector<16x1xf32> to vector<16x256xf32>
    %13 = arith.addf %11, %12 : vector<16x256xf32>
    %cst_13 = arith.constant 0.000000e+00 : f32
    %14 = vector.broadcast %cst_13 : f32 to vector<16x256xf32>
    %15 = arith.maximumf %13, %14 : vector<16x256xf32>
    %c0_14 = arith.constant 0 : index
    %c0_15 = arith.constant 0 : index
    %16 = vector.load %arg7[%c0_14, %c0_15] : memref<16x16xf32, #tpu.memory_space<vmem>>, vector<16x16xf32>
    %c0_16 = arith.constant 0 : index
    %c0_17 = arith.constant 0 : index
    %17 = vector.load %arg8[%c0_16, %c0_17] : memref<16x1xf32, #tpu.memory_space<vmem>>, vector<16x1xf32>
    %cst_18 = arith.constant dense<0.000000e+00> : vector<16x256xf32>
    %18 = tpu.matmul %16, %15, %cst_18 {dimension_numbers = #tpu.dot_dimension_numbers<[1], [0], [0], [1], [0, 0, 1, 1], [], []>} : vector<16x16xf32>, vector<16x256xf32>, vector<16x256xf32> -> vector<16x256xf32>
    %19 = vector.broadcast %17 : vector<16x1xf32> to vector<16x256xf32>
    %20 = arith.addf %18, %19 : vector<16x256xf32>
    %cst_19 = arith.constant 0.000000e+00 : f32
    %21 = vector.broadcast %cst_19 : f32 to vector<16x256xf32>
    %22 = arith.maximumf %20, %21 : vector<16x256xf32>
    %23 = vector.extract_strided_slice %22 {offsets = [0, 0], sizes = [16, 64], strides = [1, 1]} : vector<16x256xf32> to vector<16x64xf32>
    %24 = vector.extract_strided_slice %22 {offsets = [0, 64], sizes = [16, 64], strides = [1, 1]} : vector<16x256xf32> to vector<16x64xf32>
    %25 = arith.maximumf %23, %24 : vector<16x64xf32>
    %26 = vector.extract_strided_slice %22 {offsets = [0, 128], sizes = [16, 64], strides = [1, 1]} : vector<16x256xf32> to vector<16x64xf32>
    %27 = vector.extract_strided_slice %22 {offsets = [0, 192], sizes = [16, 64], strides = [1, 1]} : vector<16x256xf32> to vector<16x64xf32>
    %28 = arith.maximumf %26, %27 : vector<16x64xf32>
    %29 = arith.maximumf %25, %28 : vector<16x64xf32>
    %c0_20 = arith.constant 0 : index
    %c0_21 = arith.constant 0 : index
    %c0_22 = arith.constant 0 : index
    %30 = vector.load %arg9[%c0_20, %c0_21, %c0_22] : memref<1x16x64xf32, #tpu.memory_space<vmem>>, vector<1x16x64xf32>
    %31 = vector.shape_cast %30 : vector<1x16x64xf32> to vector<16x64xf32>
    %32 = vector.shape_cast %29 : vector<16x64xf32> to vector<1x16x64xf32>
    tpu.vector_store %arg9[%c0_20, %c0_21, %c0_22], %32 {strides = array<i32>} : memref<1x16x64xf32, #tpu.memory_space<vmem>>, vector<1x16x64xf32>,
    return
  }
  func.func @transform_0(%arg0: i32, %arg1: i32) -> (i32, i32, i32, i32) {
    %c0_i32 = arith.constant 0 : i32
    %c0_i32_0 = arith.constant 0 : i32
    %c0_i32_1 = arith.constant 0 : i32
    return %arg0, %arg1, %c0_i32, %c0_i32_0 : i32, i32, i32, i32
  }
  func.func @transform_1(%arg0: i32, %arg1: i32) -> (i32, i32) {
    %c0_i32 = arith.constant 0 : i32
    %c0_i32_0 = arith.constant 0 : i32
    %c0_i32_1 = arith.constant 0 : i32
    return %c0_i32, %c0_i32_0 : i32, i32
  }
  func.func @transform_2(%arg0: i32, %arg1: i32) -> (i32, i32) {
    %c0_i32 = arith.constant 0 : i32
    %c0_i32_0 = arith.constant 0 : i32
    %c0_i32_1 = arith.constant 0 : i32
    return %c0_i32, %c0_i32_0 : i32, i32
  }
  func.func @transform_3(%arg0: i32, %arg1: i32) -> (i32, i32) {
    %c0_i32 = arith.constant 0 : i32
    %c0_i32_0 = arith.constant 0 : i32
    %c0_i32_1 = arith.constant 0 : i32
    return %c0_i32, %c0_i32_0 : i32, i32
  }
  func.func @transform_4(%arg0: i32, %arg1: i32) -> (i32, i32) {
    %c0_i32 = arith.constant 0 : i32
    %c0_i32_0 = arith.constant 0 : i32
    %c0_i32_1 = arith.constant 0 : i32
    return %c0_i32, %c0_i32_0 : i32, i32
  }
  func.func @transform_5(%arg0: i32, %arg1: i32) -> (i32, i32) {
    %c0_i32 = arith.constant 0 : i32
    %c0_i32_0 = arith.constant 0 : i32
    %c0_i32_1 = arith.constant 0 : i32
    return %c0_i32, %c0_i32_0 : i32, i32
  }
  func.func @transform_6(%arg0: i32, %arg1: i32) -> (i32, i32) {
    %c0_i32 = arith.constant 0 : i32
    %c0_i32_0 = arith.constant 0 : i32
    %c0_i32_1 = arith.constant 0 : i32
    return %c0_i32, %c0_i32_0 : i32, i32
  }
  func.func @transform_7(%arg0: i32, %arg1: i32) -> (i32, i32, i32) {
    %c0_i32 = arith.constant 0 : i32
    %c0_i32_0 = arith.constant 0 : i32
    return %arg0, %c0_i32, %arg1 : i32, i32, i32
  }
}

</mosaic_0001>

<bundles_post_ra>
// kernel: basic_block_forward.1
= control target key start
LH: loop header
LB: loop body
LE: loop exit
PB: predicated region body
PF: predicated region fallthrough
CT: control target
= control target key end

     0   :  { %s848_s24 = smov 0   ;;  %s850_s25 = smov 0   ;;  %s934_s0 = inlined_call_operand.vmem [shape: f32[2,1,8,256], index: 0, kind: input, shape index: {}]   ;;  %s935_s1 = inlined_call_operand.vmem [shape: f32[16,8], index: 1, kind: input, shape index: {}]   ;;  %s936_s2 = inlined_call_operand.vmem [shape: f32[16,1], index: 2, kind: input, shape index: {}]   ;;  %s937_s3 = inlined_call_operand.vmem [shape: f32[16,16], index: 3, kind: input, shape index: {}]   ;;  %s938_s4 = inlined_call_operand.vmem [shape: f32[16,1], index: 4, kind: input, shape index: {}]   ;;  %s939_s5 = inlined_call_operand.vmem [shape: f32[16,16], index: 5, kind: input, shape index: {}]   ;;  %s940_s6 = inlined_call_operand.vmem [shape: f32[16,1], index: 6, kind: input, shape index: {}]   ;;  %s941_s7 = inlined_call_operand.vmem [shape: f32[2,16,64], index: 7, kind: output, shape index: {}]  }
   0x1   :  { %s852_s26 = smov 0  }
   0x2 LB: > { %s29_s27 = sadd.s32 1, %s799_s25  ;;  %p735_p0 = scmp.ge.s32.totalorder %s803_s26, 1  ;;  %s803_s26 = sphi %s852_s26, %s17_s26   ;;  %s799_s25 = sphi %s850_s25, %s943_s25   ;;  %s795_s24 = sphi %s848_s24, %s942_s24  }
   0x3   : > { %p31_p1 = scmp.ge.s32.totalorder %s29_s27, 2  ;;  %p257_p2 = scmp.lt.s32.totalorder %s803_s26, 3 }
   0x5   : > { %s945_s27 = smov (%p31_p1, %s29_s27), 0  ;;  %p258_p3 = pnand %p735_p0, %p257_p2 }
   0x6   : > { %p296_p4 = scmp.lt.s32.totalorder (!%p258_p3), %s795_s24, 1  ;;  %s807_s15 = smov (!%p258_p3), 64  }
   0x7   : > { %261 = sbr.rel (%p258_p3) target bundleno = 753 (0x2f1), region = 48 }
   0xc   : > { %v805_v0 = vmov 0.0   ;;  %v318_v1 = vld [vmem:[%s936_s2 + $0x8] sm:$0xff]  ;;  %s947_s24 = smov (!%p296_p4, %s795_s24), 1  ;;  %v806_v2 = vmov 0   ;;  %v315_v3 = vld [vmem:[%s935_s1] sm:$0xff]  ;;  %vm329_vm0 = vcmask 64512  }
   0xd   : > { %400 = vmatprep.mubr.f32.mxu0 %v805_v0  ;;  %406 = vmatprep.mubr.f32.mxu1 %v805_v0  ;;  %s748_s30 = sshll.u32 %s947_s24, 4  ;;  %v316_v6 = vld [vmem:[%s935_s1 + $0x8] sm:$0xff]  ;;  %v317_v7 = vld [vmem:[%s936_s2] sm:$0xff]  ;;  %vm431_vm1 = vcmask 130048   ;;  %vm642_vm2 = vcmask 523264  }
   0xe   : > { %779 = vset.pattern.permute.xlu0 %v806_v2  ;;  %780 = vset.pattern.permute.xlu1 %v806_v2  ;;  %s304_s10 = scalar_lea.vmem %s934_s0, %s748_s30  ;;  %v521_v8 = vld [vmem:[%s940_s6] sm:$0xff]  ;;  %v420_v9 = vld [vmem:[%s938_s4 + $0x8] sm:$0xff]  ;;  %s312_s18 = scalar_lea.vmem %s941_s7, %s748_s30 }
   0xf   : > { %326 = vperm.xlu0 %779, %v318_v1   ;;  %v314_v4 = vld [vmem:[%s304_s10 + $0x8] sm:$0xff]  ;;  %v313_v5 = vld [vmem:[%s304_s10] sm:$0xff]  ;;  %428 = vperm.xlu1 %780, %v420_v9  }
  0x10   : > { %366 = vmatprep.subr.mxu0 %v314_v4  ;;  %750 = vmatprep.subr.mxu1 %v314_v4  ;;  %v419_v10 = vld [vmem:[%s938_s4] sm:$0xff]  ;;  %v522_v11 = vld [vmem:[%s940_s6 + $0x8] sm:$0xff] }
  0x11   : > { %367 = vmatpush1.msra.mxu0 %v313_v5  ;;  %751 = vmatpush1.msra.mxu1 %v313_v5  ;;  %v417_v26 = vld [vmem:[%s937_s3] sm:$0xff]  ;;  %v418_v27 = vld [vmem:[%s937_s3 + $0x8] sm:$0xff] }
  0x12   : > { %740 = vmatmul.mubr.msk.f32.vlgmr.msra.gmra.mxu0 %vm329_vm0, %v315_v3  ;;  %741 = vmatmul.mubr.msk.f32.vlgmr.msra.gmra.mxu1 %vm329_vm0, %v316_v6  ;;  %v519_v42 = vld [vmem:[%s939_s5] sm:$0xff]  ;;  %v520_v43 = vld [vmem:[%s939_s5 + $0x8] sm:$0xff] }
  0x13   : > { %321 = vperm.xlu0 %779, %v317_v7   ;;  %502 = vmatprep.mubr.f32.mxu1 %v805_v0 }
  0x14   : > { %603 = vmatprep.mubr.f32.mxu0 %v805_v0  ;;  %423 = vperm.xlu1 %780, %v419_v10  }
  0x17   : > { %525 = vperm.xlu0 %779, %v521_v8  }
  0x18   : > { %530 = vperm.xlu1 %780, %v522_v11  }
  0x8a   : > { %v327_v12 = vpop.permute.xlu0 %326  ;;  %v429_v28 = vpop.permute.xlu1 %428 }
  0x8e   : > { %v322_v15 = vpop.permute.xlu0 %321 }
  0x8f   : > { %v424_v32 = vpop.permute.xlu1 %423 }
  0x92   : > { %v526_v44 = vpop.permute.xlu0 %525 }
  0x93   : > { %v531_v50 = vpop.permute.xlu1 %530 }
  0xd2   : > { %v402_v13 = vpop.f32.mrf.mxu0  ;;  %v408_v14 = vpop.f32.mrf.mxu1 }
  0xd3   : > { %v409_v16 = vadd.f32 %v408_v14, %v327_v12  ;;  %v403_v21 = vadd.f32 %v402_v13, %v322_v15 }
  0xd4   : > { %v404_v17 = vpop.f32.mrf.mxu0  ;;  %v410_v18 = vpop.f32.mrf.mxu1 }
  0xd5   : > { %v405_v19 = vadd.f32 %v404_v17, %v322_v15  ;;  %v411_v20 = vadd.f32 %v410_v18, %v327_v12  ;;  %v415_v23 = vmax.f32 %v409_v16, 0.0  ;;  %v413_v25 = vmax.f32 %v403_v21, 0.0 }
  0xd7   : > { %v416_v22 = vmax.f32 %v411_v20, 0.0  ;;  %v414_v24 = vmax.f32 %v405_v19, 0.0 }
  0xd9   : > { %466 = vmatprep.subr.mxu1 %v416_v22 }
  0xda   : > { %467 = vmatpush1.msra.mxu1 %v415_v23 }
  0xdb   : > { %468 = vmatprep.subr.mxu1 %v414_v24 }
  0xdc   : > { %469 = vmatpush1.msra.mxu1 %v413_v25 }
  0xdd   : > { %742 = vmatmul.mubr.msk.f32.vlgmr.msra.gmra.mxu1 %vm431_vm1, %v417_v26 }
  0xde   : > { %508 = vmatprep.mubr.f32.mxu1 %v805_v0 }
  0xe1   : > { %743 = vmatmul.mubr.msk.f32.gmra.mxu1 %vm431_vm1, %v418_v27 }
 0x19d   : > { %v504_v29 = vpop.f32.mrf.mxu1 }
 0x19e   : > { %v505_v37 = vadd.f32 %v504_v29, %v424_v32 }
 0x19f   : > { %v506_v30 = vpop.f32.mrf.mxu1 }
 0x1a0   : > { %v507_v35 = vadd.f32 %v506_v30, %v424_v32  ;;  %v515_v41 = vmax.f32 %v505_v37, 0.0 }
 0x1a1   : > { %v510_v31 = vpop.f32.mrf.mxu1 }
 0x1a2   : > { %v511_v33 = vadd.f32 %v510_v31, %v429_v28  ;;  %v516_v40 = vmax.f32 %v507_v35, 0.0 }
 0x1a3   : > { %v512_v34 = vpop.f32.mrf.mxu1 }
 0x1a4   : > { %v513_v36 = vadd.f32 %v512_v34, %v429_v28  ;;  %v517_v39 = vmax.f32 %v511_v33, 0.0 }
 0x1a6   : > { %v518_v38 = vmax.f32 %v513_v36, 0.0 }
 0x1a8   : > { %567 = vmatprep.subr.mxu0 %v518_v38 }
 0x1a9   : > { %568 = vmatpush1.msra.mxu0 %v517_v39 }
 0x1aa   : > { %569 = vmatprep.subr.mxu0 %v516_v40 }
 0x1ab   : > { %570 = vmatpush1.msra.mxu0 %v515_v41 }
 0x1ac   : > { %744 = vmatmul.mubr.msk.f32.vlgmr.msra.gmra.mxu0 %vm431_vm1, %v519_v42 }
 0x1ad   : > { %609 = vmatprep.mubr.f32.mxu0 %v805_v0 }
 0x1b0   : > { %745 = vmatmul.mubr.msk.f32.gmra.mxu0 %vm431_vm1, %v520_v43 }
 0x26c   : > { %v605_v45 = vpop.f32.mrf.mxu0 }
 0x26d   : > { %v606_v46 = vadd.f32 %v605_v45, %v526_v44 }
 0x26e   : > { %v607_v47 = vpop.f32.mrf.mxu0 }
 0x26f   : > { %v616_v48 = vmax.f32 %v606_v46, 0.0  ;;  %v608_v49 = vadd.f32 %v607_v47, %v526_v44 }
 0x270   : > { %v611_v51 = vpop.f32.mrf.mxu0 }
 0x271   : > { %v612_v52 = vadd.f32 %v611_v51, %v531_v50  ;;  %622 = vrot.lane.b32.xlu0 %v616_v48, %s807_s15  ;;  %v617_v54 = vmax.f32 %v608_v49, 0.0 }
 0x272   : > { %v613_v53 = vpop.f32.mrf.mxu0 }
 0x273   : > { %v618_v55 = vmax.f32 %v612_v52, 0.0  ;;  %v614_v56 = vadd.f32 %v613_v53, %v531_v50 }
 0x275   : > { %624 = vrot.lane.b32.xlu1 %v618_v55, %s807_s15  ;;  %632 = vrot.lane.b32.xlu0 %v617_v54, %s807_s15  ;;  %v619_v57 = vmax.f32 %v614_v56, 0.0 }
 0x279   : > { %634 = vrot.lane.b32.xlu1 %v619_v57, %s807_s15 }
 0x2e3   : > { %v623_v58 = vpop.permute.xlu0 %622 }
 0x2e4   : > { %v628_v61 = vmax.f32 %v616_v48, %v623_v58 }
 0x2e7   : > { %v625_v59 = vpop.permute.xlu1 %624  ;;  %v633_v60 = vpop.permute.xlu0 %632 }
 0x2e8   : > { %v638_v62 = vmax.f32 %v617_v54, %v633_v60  ;;  %v629_v1 = vmax.f32 %v618_v55, %v625_v59 }
 0x2ea   : > { %v640_v63 = vmax.f32 %v628_v61, %v638_v62 }
 0x2eb   : > { %v635_v0 = vpop.permute.xlu1 %634 }
 0x2ec   : > { %643 = vst.msk [vmem:[%s312_s18] sm:$0xff] %vm642_vm2, %v640_v63  ;;  %v639_v2 = vmax.f32 %v619_v57, %v635_v0 }
 0x2ee   : > { %v641_v3 = vmax.f32 %v629_v1, %v639_v2 }
 0x2f0   : > { %644 = vst.msk [vmem:[%s312_s18 + $0x8] sm:$0xff] %vm642_vm2, %v641_v3 }
 0x2f1 PF: > { %s17_s26 = sadd.s32 1, %s803_s26   ;;  %s942_s24 = smov %s799_s25 }
 0x2f2   : > { %p14_p5 = scmp.ge.s32.totalorder %s17_s26, 4   ;;  %s943_s25 = smov %s945_s27 }
 0x2f4   :  { %16 = sbr.rel (!%p14_p5) target bundleno = 2 (0x2), region = 78 }

</bundles_post_ra>
